<compile_context>
chip_gen: v5e
topology: v5e:2x2
jax: 0.10.0
libtpu: 0.0.40
codegen_flags: <defaults>
</compile_context>

<pallas_src>
import jax
import jax.numpy as jnp
from jax import lax
from jax.experimental import pallas as pl
from jax.experimental.pallas import tpu as pltpu


def _compat_kernel(x_ref, w_ref, b_ref, s_ref, o_ref):
    # Fold the class embeddings into the linear layer (done per grid step; at
    # production batch sizes this costs ~d_out/TB of the main matmul).
    #   W_f = s @ W : (C_pad, d_in)   -- plain (M,K)x(K,N), no transpose.
    w_f = jnp.dot(s_ref[...], w_ref[...], preferred_element_type=jnp.float32)
    #   b_f = b @ s^T : (1, C_pad)    -- contract last dims, RHS fed transposed
    #                                    to the MXU, nothing materialized.
    b_f = lax.dot_general(b_ref[...], s_ref[...],
                          (((1,), (1,)), ((), ())),
                          preferred_element_type=jnp.float32)
    #   out = x @ W_f^T + b_f : (TB, C_pad) -- again last-dim contraction.
    out = lax.dot_general(x_ref[...], w_f,
                          (((1,), (1,)), ((), ())),
                          preferred_element_type=jnp.float32)
    o_ref[...] = (out + b_f).astype(o_ref.dtype)


def compatibility_forward(x, w, b, s):
    """x: (B, d_in), w: (d_out, d_in), b: (d_out,), s: (C, d_out) -> (B, C)."""
    B, d_in = x.shape
    d_out = w.shape[0]
    C = s.shape[0]

    LANE, SUB = 128, 8
    # Lane-dense output: pad class dim to a full 128-lane register (zero rows
    # of s contribute zeros that are sliced away afterwards).
    C_pad = ((C + LANE - 1) // LANE) * LANE
    # Batch tile: multiple of 8 sublanes, capped at 128 rows per step.
    TB = min(128, ((B + SUB - 1) // SUB) * SUB)
    B_pad = ((B + TB - 1) // TB) * TB

    x_p = jnp.pad(x, ((0, B_pad - B), (0, 0))) if B_pad != B else x
    s_p = jnp.pad(s, ((0, C_pad - C), (0, 0))) if C_pad != C else s
    b2 = b.reshape(1, d_out)

    out = pl.pallas_call(
        _compat_kernel,
        out_shape=jax.ShapeDtypeStruct((B_pad, C_pad), jnp.float32),
        grid_spec=pltpu.PrefetchScalarGridSpec(
            num_scalar_prefetch=0,
            grid=(B_pad // TB,),
            in_specs=[
                pl.BlockSpec((TB, d_in), lambda i: (i, 0)),      # x tile
                pl.BlockSpec((d_out, d_in), lambda i: (0, 0)),   # W (resident)
                pl.BlockSpec((1, d_out), lambda i: (0, 0)),      # b (resident)
                pl.BlockSpec((C_pad, d_out), lambda i: (0, 0)),  # s (resident)
            ],
            out_specs=pl.BlockSpec((TB, C_pad), lambda i: (i, 0)),
        ),
        compiler_params=pltpu.CompilerParams(
            dimension_semantics=("parallel",)),
    )(x_p, w, b2, s_p)

    return out[:B, :C]


if __name__ == "__main__":
    # Small shapes consistent with the module's forward:
    #   x: (batch, d_in), s: (num_classes, d_out)
    B, d_in, d_out, C = 8, 32, 16, 4

    key = jax.random.PRNGKey(0)
    kx, ks, kw, kb = jax.random.split(key, 4)

    x = jax.random.normal(kx, (B, d_in), dtype=jnp.float32)
    s = jax.random.normal(ks, (C, d_out), dtype=jnp.float32)

    # Deterministic parameter init mimicking nn.Linear (uniform in +-1/sqrt(d_in)).
    bound = 1.0 / (d_in ** 0.5)
    w = jax.random.uniform(kw, (d_out, d_in), minval=-bound, maxval=bound,
                           dtype=jnp.float32)
    b = jax.random.uniform(kb, (d_out,), minval=-bound, maxval=bound,
                           dtype=jnp.float32)

    out = compatibility_forward(x, w, b, s)
    out = jax.block_until_ready(out)

    # Reference check in plain JAX (same math as the PyTorch module).
    # The algebraic fusion reorders the f32 summation, so allow a slightly
    # relaxed tolerance.
    ref = (x @ w.T + b) @ s.T
    assert out.shape == (B, C)
    assert jnp.allclose(out, ref, atol=1e-3, rtol=1e-3)

    print("KERNEL_OK")
</pallas_src>

<mosaic_0001>
module attributes {stable_mosaic.version = 11 : i64} {
  func.func @_compat_kernel(%arg0: i32, %arg1: memref<8x32xf32, #tpu.memory_space<vmem>>, %arg2: memref<16x32xf32, #tpu.memory_space<vmem>>, %arg3: memref<1x16xf32, #tpu.memory_space<vmem>>, %arg4: memref<128x16xf32, #tpu.memory_space<vmem>>, %arg5: memref<8x128xf32, #tpu.memory_space<vmem>>) attributes {dimension_semantics = [#tpu.dimension_semantics<parallel>], iteration_bounds = array<i64: 1>, scalar_prefetch = 0 : i64, scratch_operands = 0 : i64, tpu.core_type = #tpu.core_type<tc>, window_params = [{transform_indices = @transform_0, window_bounds = array<i64: 8, 32>}, {pipeline_mode = #tpu.pipeline_mode<synchronous>, transform_indices = @transform_1, window_bounds = array<i64: 16, 32>}, {pipeline_mode = #tpu.pipeline_mode<synchronous>, transform_indices = @transform_2, window_bounds = array<i64: 1, 16>}, {pipeline_mode = #tpu.pipeline_mode<synchronous>, transform_indices = @transform_3, window_bounds = array<i64: 128, 16>}, {transform_indices = @transform_4, window_bounds = array<i64: 8, 128>}]} {
    %c0 = arith.constant 0 : index
    %c0_0 = arith.constant 0 : index
    %0 = vector.load %arg4[%c0, %c0_0] : memref<128x16xf32, #tpu.memory_space<vmem>>, vector<128x16xf32>
    %c0_1 = arith.constant 0 : index
    %c0_2 = arith.constant 0 : index
    %1 = vector.load %arg2[%c0_1, %c0_2] : memref<16x32xf32, #tpu.memory_space<vmem>>, vector<16x32xf32>
    %cst = arith.constant dense<0.000000e+00> : vector<128x32xf32>
    %2 = tpu.matmul %0, %1, %cst {dimension_numbers = #tpu.dot_dimension_numbers<[1], [0], [0], [1], [0, 0, 1, 1], [], []>} : vector<128x16xf32>, vector<16x32xf32>, vector<128x32xf32> -> vector<128x32xf32>
    %c0_3 = arith.constant 0 : index
    %c0_4 = arith.constant 0 : index
    %3 = vector.load %arg3[%c0_3, %c0_4] : memref<1x16xf32, #tpu.memory_space<vmem>>, vector<1x16xf32>
    %c0_5 = arith.constant 0 : index
    %c0_6 = arith.constant 0 : index
    %4 = vector.load %arg4[%c0_5, %c0_6] : memref<128x16xf32, #tpu.memory_space<vmem>>, vector<128x16xf32>
    %cst_7 = arith.constant dense<0.000000e+00> : vector<1x128xf32>
    %5 = tpu.matmul %3, %4, %cst_7 {dimension_numbers = #tpu.dot_dimension_numbers<[1], [1], [0], [0], [0, 0, 1, 0], [], []>} : vector<1x16xf32>, vector<128x16xf32>, vector<1x128xf32> -> vector<1x128xf32>
    %c0_8 = arith.constant 0 : index
    %c0_9 = arith.constant 0 : index
    %6 = vector.load %arg1[%c0_8, %c0_9] : memref<8x32xf32, #tpu.memory_space<vmem>>, vector<8x32xf32>
    %cst_10 = arith.constant dense<0.000000e+00> : vector<8x128xf32>
    %7 = tpu.matmul %6, %2, %cst_10 {dimension_numbers = #tpu.dot_dimension_numbers<[1], [1], [0], [0], [0, 0, 1, 0], [], []>} : vector<8x32xf32>, vector<128x32xf32>, vector<8x128xf32> -> vector<8x128xf32>
    %8 = vector.broadcast %5 : vector<1x128xf32> to vector<8x128xf32>
    %9 = arith.addf %7, %8 : vector<8x128xf32>
    %c0_11 = arith.constant 0 : index
    %c0_12 = arith.constant 0 : index
    %10 = vector.load %arg5[%c0_11, %c0_12] : memref<8x128xf32, #tpu.memory_space<vmem>>, vector<8x128xf32>
    tpu.vector_store %arg5[%c0_11, %c0_12], %9 {strides = array<i32>} : memref<8x128xf32, #tpu.memory_space<vmem>>, vector<8x128xf32>,
    return
  }
  func.func @transform_0(%arg0: i32) -> (i32, i32) {
    %c0_i32 = arith.constant 0 : i32
    %c0_i32_0 = arith.constant 0 : i32
    return %arg0, %c0_i32 : i32, i32
  }
  func.func @transform_1(%arg0: i32) -> (i32, i32) {
    %c0_i32 = arith.constant 0 : i32
    %c0_i32_0 = arith.constant 0 : i32
    %c0_i32_1 = arith.constant 0 : i32
    return %c0_i32, %c0_i32_0 : i32, i32
  }
  func.func @transform_2(%arg0: i32) -> (i32, i32) {
    %c0_i32 = arith.constant 0 : i32
    %c0_i32_0 = arith.constant 0 : i32
    %c0_i32_1 = arith.constant 0 : i32
    return %c0_i32, %c0_i32_0 : i32, i32
  }
  func.func @transform_3(%arg0: i32) -> (i32, i32) {
    %c0_i32 = arith.constant 0 : i32
    %c0_i32_0 = arith.constant 0 : i32
    %c0_i32_1 = arith.constant 0 : i32
    return %c0_i32, %c0_i32_0 : i32, i32
  }
  func.func @transform_4(%arg0: i32) -> (i32, i32) {
    %c0_i32 = arith.constant 0 : i32
    %c0_i32_0 = arith.constant 0 : i32
    return %arg0, %c0_i32 : i32, i32
  }
}

</mosaic_0001>

<bundles_post_ra>
// kernel: tpu_custom_call.1
= control target key start
LH: loop header
LB: loop body
LE: loop exit
PB: predicated region body
PF: predicated region fallthrough
CT: control target
= control target key end

     0   :  { %vm36_vm0 = vcmask 130048   ;;  %s483_s0 = inlined_call_operand.vmem [shape: f32[8,32], index: 0, kind: input, shape index: {}]   ;;  %s484_s1 = inlined_call_operand.vmem [shape: f32[16,32], index: 1, kind: input, shape index: {}]   ;;  %s485_s2 = inlined_call_operand.vmem [shape: f32[1,16], index: 2, kind: input, shape index: {}]   ;;  %s486_s3 = inlined_call_operand.vmem [shape: f32[128,16], index: 3, kind: input, shape index: {}]   ;;  %s487_s4 = inlined_call_operand.hbm [shape: f32[8,128], index: 4, kind: output, shape index: {}]  }
   0x1   :  { %v35_v0 = vld [vmem:[%s484_s1 + $0x8] sm:$0xff]  ;;  %v34_v1 = vld [vmem:[%s484_s1] sm:$0xff] }
   0x2   :  { %315 = vmatpush.msra.mxu3 %v35_v0  ;;  %v27_v2 = vld [vmem:[%s486_s3 + $0x48] sm:$0xff]  ;;  %99 = vmatpush.msra.mxu0 %v35_v0  ;;  %v18_v3 = vld [vmem:[%s486_s3] sm:$0xff] }
   0x4   :  { %316 = vmatpush.msra.mxu3 %v34_v1  ;;  %100 = vmatpush.msra.mxu0 %v34_v1 }
   0x5   :  { %9 = vsyncpa [#allocation3], 0  ;;  %274 = vmatmul.msk.f32.vlgmr.msra.gmra.mxu3 %vm36_vm0, %v27_v2  ;;  %265 = vmatmul.msk.f32.vlgmr.msra.gmra.mxu0 %vm36_vm0, %v18_v3  ;;  %v28_v4 = vld [vmem:[%s486_s3 + $0x50] sm:$0xff]  ;;  %v19_v5 = vld [vmem:[%s486_s3 + $0x8] sm:$0xff]  ;;  %vm176_vm1 = vcmask 261120   ;;  %s344_s25 = smov [#allocation2]  }
   0x6   :  { %v33_v6 = vld [vmem:[%s486_s3 + $0x78] sm:$0xff]  ;;  %v32_v7 = vld [vmem:[%s486_s3 + $0x70] sm:$0xff]  ;;  %v31_v10 = vld [vmem:[%s486_s3 + $0x68] sm:$0xff]  ;;  %s254_s26 = sshll.u32 %s344_s25, 4  ;;  %s256_s29 = sshll.u32 %s487_s4, 4  ;;  %s255_s26 = int_to_ptr.vmem [resolvable:$true] %s254_s26  ;;  %s257_s29 = int_to_ptr.hbm [resolvable:$true] %s256_s29 }
   0x7   :  { %281 = vmatpush.xpose.msk.msra.mxu1 %vm36_vm0, %v33_v6  ;;  %v29_v8 = vld [vmem:[%s486_s3 + $0x58] sm:$0xff]  ;;  %v20_v9 = vld [vmem:[%s486_s3 + $0x10] sm:$0xff]  ;;  %v30_v11 = vld [vmem:[%s486_s3 + $0x60] sm:$0xff] }
   0x8   :  { %v21_v12 = vld [vmem:[%s486_s3 + $0x18] sm:$0xff]  ;;  %v22_v13 = vld [vmem:[%s486_s3 + $0x20] sm:$0xff]  ;;  %v23_v15 = vld [vmem:[%s486_s3 + $0x28] sm:$0xff] }
   0x9   :  { %v26_v14 = vld [vmem:[%s486_s3 + $0x40] sm:$0xff]  ;;  %v25_v16 = vld [vmem:[%s486_s3 + $0x38] sm:$0xff]  ;;  %v24_v17 = vld [vmem:[%s486_s3 + $0x30] sm:$0xff] }
   0xa   :  { %v150_v34 = vld [vmem:[%s485_s2] sm:$0x1] }
   0xb   :  { %282 = vmatpush.xpose.msk.msra.mxu1 %vm36_vm0, %v32_v7  ;;  %v174_v35 = vld [vmem:[%s483_s0] sm:$0xff] }
   0xd   :  { %275 = vmatmul.msk.f32.gmra.mxu3 %vm36_vm0, %v28_v4  ;;  %266 = vmatmul.msk.f32.gmra.mxu0 %vm36_vm0, %v19_v5 }
   0xf   :  { %283 = vmatpush.xpose.msk.msra.mxu1 %vm36_vm0, %v31_v10 }
  0x13   :  { %284 = vmatpush.xpose.msk.msra.mxu1 %vm36_vm0, %v30_v11 }
  0x15   :  { %276 = vmatmul.msk.f32.gmra.mxu3 %vm36_vm0, %v29_v8  ;;  %267 = vmatmul.msk.f32.gmra.mxu0 %vm36_vm0, %v20_v9 }
  0x17   :  { %285 = vmatpush.xpose.msk.msra.mxu1 %vm36_vm0, %v29_v8 }
  0x1b   :  { %286 = vmatpush.xpose.msk.msra.mxu1 %vm36_vm0, %v28_v4 }
  0x1d   :  { %277 = vmatmul.msk.f32.gmra.mxu3 %vm36_vm0, %v30_v11  ;;  %268 = vmatmul.msk.f32.gmra.mxu0 %vm36_vm0, %v21_v12 }
  0x1f   :  { %287 = vmatpush.xpose.msk.msra.mxu1 %vm36_vm0, %v27_v2 }
  0x23   :  { %288 = vmatpush.xpose.msk.msra.mxu1 %vm36_vm0, %v26_v14 }
  0x25   :  { %278 = vmatmul.msk.f32.gmra.mxu3 %vm36_vm0, %v31_v10  ;;  %269 = vmatmul.msk.f32.gmra.mxu0 %vm36_vm0, %v22_v13 }
  0x27   :  { %289 = vmatpush.xpose.msk.msra.mxu1 %vm36_vm0, %v25_v16 }
  0x2b   :  { %290 = vmatpush.xpose.msk.msra.mxu1 %vm36_vm0, %v24_v17 }
  0x2d   :  { %279 = vmatmul.msk.f32.gmra.mxu3 %vm36_vm0, %v32_v7  ;;  %270 = vmatmul.msk.f32.gmra.mxu0 %vm36_vm0, %v23_v15 }
  0x2f   :  { %291 = vmatpush.xpose.msk.msra.mxu1 %vm36_vm0, %v23_v15 }
  0x33   :  { %292 = vmatpush.xpose.msk.msra.mxu1 %vm36_vm0, %v22_v13 }
  0x35   :  { %280 = vmatmul.msk.f32.gmra.mxu3 %vm36_vm0, %v33_v6  ;;  %271 = vmatmul.msk.f32.gmra.mxu0 %vm36_vm0, %v24_v17 }
  0x37   :  { %293 = vmatpush.xpose.msk.msra.mxu1 %vm36_vm0, %v21_v12 }
  0x3b   :  { %294 = vmatpush.xpose.msk.msra.mxu1 %vm36_vm0, %v20_v9 }
  0x3d   :  { %272 = vmatmul.msk.f32.gmra.mxu0 %vm36_vm0, %v25_v16 }
  0x3f   :  { %295 = vmatpush.xpose.msk.msra.mxu1 %vm36_vm0, %v19_v5 }
  0x43   :  { %296 = vmatpush.xpose.msk.msra.mxu1 %vm36_vm0, %v18_v3 }
  0x45   :  { %273 = vmatmul.msk.f32.gmra.mxu0 %vm36_vm0, %v26_v14 }
  0x46   :  { %297 = vmatmul.msk.f32.vlgmr.msra.gmra.mxu1 %vm36_vm0, %v150_v34 }
  0x82   :  { %v102_v18 = vpop.f32.mrf.mxu0 }
  0x88   :  { %v129_v19 = vpop.f32.mrf.mxu3 }
  0x8a   :  { %v105_v20 = vpop.f32.mrf.mxu0 }
  0x90   :  { %v132_v21 = vpop.f32.mrf.mxu3 }
  0x92   :  { %v108_v22 = vpop.f32.mrf.mxu0 }
  0x98   :  { %v135_v23 = vpop.f32.mrf.mxu3 }
  0x9a   :  { %v111_v25 = vpop.f32.mrf.mxu0 }
  0xa0   :  { %v138_v24 = vpop.f32.mrf.mxu3 }
  0xa2   :  { %v114_v27 = vpop.f32.mrf.mxu0 }
  0xa8   :  { %v141_v26 = vpop.f32.mrf.mxu3 }
  0xaa   :  { %v117_v29 = vpop.f32.mrf.mxu0 }
  0xb0   :  { %v144_v28 = vpop.f32.mrf.mxu3 }
  0xb2   :  { %v120_v31 = vpop.f32.mrf.mxu0 }
  0xb8   :  { %v147_v30 = vpop.f32.mrf.mxu3 }
  0xb9   :  { %298 = vmatpush.xpose.msk.msra.mxu2 %vm176_vm1, %v147_v30 }
  0xba   :  { %v123_v32 = vpop.f32.mrf.mxu0 }
  0xbd   :  { %299 = vmatpush.xpose.msk.msra.mxu2 %vm176_vm1, %v144_v28 }
  0xc1   :  { %300 = vmatpush.xpose.msk.msra.mxu2 %vm176_vm1, %v141_v26 }
  0xc2   :  { %v126_v33 = vpop.f32.mrf.mxu0 }
  0xc3   :  { %v171_v36 = vpop.f32.mrf.mxu1 }
  0xc4   :  { %v175_v37 = vperm.slane %v171_v36, 0 }
  0xc5   :  { %301 = vmatpush.xpose.msk.msra.mxu2 %vm176_vm1, %v138_v24 }
  0xc9   :  { %302 = vmatpush.xpose.msk.msra.mxu2 %vm176_vm1, %v135_v23 }
  0xcd   :  { %303 = vmatpush.xpose.msk.msra.mxu2 %vm176_vm1, %v132_v21 }
  0xd1   :  { %304 = vmatpush.xpose.msk.msra.mxu2 %vm176_vm1, %v129_v19 }
  0xd5   :  { %305 = vmatpush.xpose.msk.msra.mxu2 %vm176_vm1, %v126_v33 }
  0xd9   :  { %306 = vmatpush.xpose.msk.msra.mxu2 %vm176_vm1, %v123_v32 }
  0xdd   :  { %307 = vmatpush.xpose.msk.msra.mxu2 %vm176_vm1, %v120_v31 }
  0xe1   :  { %308 = vmatpush.xpose.msk.msra.mxu2 %vm176_vm1, %v117_v29 }
  0xe5   :  { %309 = vmatpush.xpose.msk.msra.mxu2 %vm176_vm1, %v114_v27 }
  0xe9   :  { %310 = vmatpush.xpose.msk.msra.mxu2 %vm176_vm1, %v111_v25 }
  0xed   :  { %311 = vmatpush.xpose.msk.msra.mxu2 %vm176_vm1, %v108_v22 }
  0xf1   :  { %312 = vmatpush.xpose.msk.msra.mxu2 %vm176_vm1, %v105_v20 }
  0xf5   :  { %313 = vmatpush.xpose.msk.msra.mxu2 %vm176_vm1, %v102_v18 }
  0xf8   :  { %314 = vmatmul.msk.f32.vlgmr.msra.gmra.mxu2 %vm176_vm1, %v174_v35 }
 0x17b   :  { %v245_v38 = vpop.f32.mrf.mxu2 }
 0x17c   :  { %v246_v39 = vadd.f32 %v245_v38, %v175_v37 }
 0x17e   :  { %248 = vst [vmem:[#allocation2] sm:$0xff] %v246_v39 }
 0x17f   :  { %259 = dma.vmem_to_hbm [thread:$0]  %s255_s26, 128, %s257_s29, [#allocation3]  }
 0x180   :  { %342 = dma.done.wait [#allocation3], 128  }
 0x181   :  { %343 = vsyncadd [#allocation3], 4294967168 }
 0x182   :  { %264 = vsyncpa [#allocation3], 1 }

</bundles_post_ra>
